<compile_context>
chip_gen: v6e
topology: v6e:2x2x1
jax: 0.10.0
libtpu: 0.0.40
codegen_flags: <defaults>
</compile_context>

<pallas_src>
import functools

import jax
import jax.numpy as jnp
from jax import lax
from jax.experimental import pallas as pl
from jax.experimental.pallas import tpu as pltpu


_EPS = 1e-12  # matches torch.nn.functional.normalize default eps


def _round_up(x, m):
    return ((x + m - 1) // m) * m


def _vmem_budget_bytes():
    """Generation-aware VMEM budget (also used as the compiler limit)."""
    try:
        cap = int(pltpu.get_tpu_info().vmem_capacity_bytes)
    except Exception:
        cap = 64 * 1024 * 1024          # conservative fallback (v7x per-TC size)
    # ~25% headroom for compiler-internal scratch, capped at 100 MiB:
    # ~96 MiB on v5e/v6e (128 MiB VMEM), ~48 MiB on v7x (64 MiB VMEM).
    return min(cap * 3 // 4, 100 * 1024 * 1024)


def _est_vmem_bytes(tb, tc, E):
    f32 = 4  # conservative: assume f32 buffers everywhere
    return (2 * tb * E * f32        # x blocks (double-buffered)
            + 2 * tc * E * f32      # streamed weight blocks (double-buffered)
            + tc * E * f32          # in-kernel normalized-weight tile
            + 2 * tb * tc * f32     # output blocks (double-buffered)
            + 2 * tb * f32          # per-row scale blocks
            + (1 << 20))            # slack


def _choose_tiles(B, C, E, packing, budget):
    # Keep the whole (padded) batch resident whenever it fits: the weight
    # matrix then makes a single HBM pass.  Shrink tb only if even a minimal
    # lane-dense tc=128 weight tile would not fit next to it.
    tb = _round_up(B, packing)
    while tb > packing and _est_vmem_bytes(tb, 128, E) > budget:
        tb = _round_up(max(packing, tb // 2), packing)
    # TODO(synk): add a K(E)-tiled reduction grid axis (f32 accumulator
    # scratch, init at k==0 / writeback at last k) for E so wide that even
    # (packing, 128) full-E tiles exceed the VMEM budget.
    if C <= 128:
        return tb, C                 # one exact full-C tile, no padded blocks
    # Grow the streamed weight tile as large as the budget allows: fewer grid
    # steps (~0.35us each) and larger DMAs => closer to the HBM roofline.
    tc = 128
    for cand in (2048, 1024, 512, 256, 128):
        c = min(cand, _round_up(C, 128))
        if _est_vmem_bytes(tb, c, E) <= budget:
            tc = c
            break
    return tb, tc


def _cosine_logits_kernel(x_ref, w_ref, rs_ref, o_ref, *, precision):
    # Row-normalize the streamed weight tile in registers (single HBM read of
    # W, no pre-pass / padded copy).  Norm math in f32, rsqrt on the EUP.
    wf = w_ref[...].astype(jnp.float32)
    inv_w = lax.rsqrt(jnp.maximum(
        jnp.sum(wf * wf, axis=1, keepdims=True), _EPS * _EPS))       # (tc, 1)
    wn = (wf * inv_w).astype(w_ref.dtype)                            # (tc, E)

    # (tb, E) x (tc, E) contracting E -> (tb, tc), f32 accumulation on the MXU.
    # TODO(synk): for a truly static classifier head, stream a pre-transposed
    # (E, tc) W^T (contract ((1,), (0,))) if the lowering shows a per-step
    # XLU transpose of the weight tile.
    sim = lax.dot_general(
        x_ref[...], wn,
        dimension_numbers=(((1,), (1,)), ((), ())),
        preferred_element_type=jnp.float32,
        precision=precision,
    )
    # Per-row scale (scale / ||x||), hoisted out of the kernel, applied to the
    # f32 accumulator block; single lane-dense store.
    o_ref[...] = (sim * rs_ref[...]).astype(o_ref.dtype)


def scaled_cosine_similarity(embeddings, weights, scale=20.0):
    """Pallas implementation of ScaledCosineSimilarityLayer.forward."""
    if embeddings.ndim == 4:
        # NCHW -> (B, E): take spatial position (0, 0), like x[:, :, 0, 0]
        embeddings = embeddings[:, :, 0, 0]
    B, E = embeddings.shape
    C, E_w = weights.shape
    assert E == E_w, "embedding_size mismatch"

    out_dtype = embeddings.dtype
    itemsize = jnp.dtype(embeddings.dtype).itemsize
    packing = max(8, 32 // max(1, itemsize))   # sublane packing: 8/16/32 (f32/bf16/i8)
    budget = _vmem_budget_bytes()
    tb, tc = _choose_tiles(B, C, E, packing, budget)

    B_pad = _round_up(B, tb)
    x = embeddings
    if B_pad != B:
        x = jnp.pad(x, ((0, B_pad - B), (0, 0)))   # zero rows: harmless, sliced away

    # scale / max(||x||, eps): tiny (B, E) reduction hoisted to plain JAX so
    # the kernel grid has no serial dependency and both axes stay "parallel".
    xf = x.astype(jnp.float32)
    row_scale = scale * lax.rsqrt(
        jnp.maximum(jnp.sum(xf * xf, axis=1, keepdims=True), _EPS * _EPS))

    b_tiles = B_pad // tb
    c_tiles = pl.cdiv(C, tc)
    C_pad = c_tiles * tc

    prec = (lax.Precision.HIGHEST
            if (embeddings.dtype == jnp.float32 and weights.dtype == jnp.float32)
            else lax.Precision.DEFAULT)
    kernel = functools.partial(_cosine_logits_kernel, precision=prec)

    out = pl.pallas_call(
        kernel,
        out_shape=jax.ShapeDtypeStruct((B_pad, C_pad), out_dtype),
        grid_spec=pltpu.PrefetchScalarGridSpec(
            num_scalar_prefetch=0,
            # C outer / B inner: the weight matrix streams through HBM exactly
            # once; x (far smaller) is the operand that gets re-read.
            grid=(c_tiles, b_tiles),
            in_specs=[
                pl.BlockSpec((tb, E), lambda j, i: (i, 0)),    # x (resident / small)
                # If profiling shows exposed weight DMA at small B, bump this
                # spec with pipeline_mode=pl.Buffered(3) (re-check VMEM on v7x).
                pl.BlockSpec((tc, E), lambda j, i: (j, 0)),    # raw W (single read)
                pl.BlockSpec((tb, 1), lambda j, i: (i, 0)),    # scale / ||x||
            ],
            out_specs=pl.BlockSpec((tb, tc), lambda j, i: (i, j)),
        ),
        compiler_params=pltpu.CompilerParams(
            dimension_semantics=("parallel", "parallel"),
            vmem_limit_bytes=budget,
        ),
    )(x, weights, row_scale)

    if (B_pad, C_pad) != (B, C):
        out = out[:B, :C]
    return out


def init_weights(key, num_classes, embedding_size):
    # Deterministic xavier_uniform_ equivalent for shape (num_classes, embedding_size).
    bound = (6.0 / (embedding_size + num_classes)) ** 0.5
    return jax.random.uniform(
        key, (num_classes, embedding_size), dtype=jnp.float32,
        minval=-bound, maxval=bound,
    )


if __name__ == "__main__":
    key = jax.random.PRNGKey(0)
    k_x, k_w = jax.random.split(key)

    batch = 2
    embedding_size = 32
    num_classes = 16
    spatial = 4

    # NCHW activations, as a conv backbone would produce.
    x = jax.random.normal(k_x, (batch, embedding_size, spatial, spatial),
                          dtype=jnp.float32)
    w = init_weights(k_w, num_classes, embedding_size)

    out = scaled_cosine_similarity(x, w, scale=20.0)
    out = jax.block_until_ready(out)

    # Reference (same math as the PyTorch module) in plain JAX.
    xe = x[:, :, 0, 0]
    xn = xe / jnp.maximum(jnp.linalg.norm(xe, axis=1, keepdims=True), _EPS)
    wn = w / jnp.maximum(jnp.linalg.norm(w, axis=1, keepdims=True), _EPS)
    ref = (xn @ wn.T) * 20.0

    assert out.shape == (batch, num_classes)
    assert jnp.allclose(out, ref, atol=1e-3, rtol=1e-3)

    print("KERNEL_OK")
</pallas_src>

<mosaic_0001>
module attributes {stable_mosaic.version = 11 : i64} {
  func.func @_cosine_logits_kernel(%arg0: i32, %arg1: i32, %arg2: memref<8x32xf32, #tpu.memory_space<vmem>>, %arg3: memref<16x32xf32, #tpu.memory_space<vmem>>, %arg4: memref<8x1xf32, #tpu.memory_space<vmem>>, %arg5: memref<8x16xf32, #tpu.memory_space<vmem>>) attributes {dimension_semantics = [#tpu.dimension_semantics<parallel>, #tpu.dimension_semantics<parallel>], iteration_bounds = array<i64: 1, 1>, scalar_prefetch = 0 : i64, scratch_operands = 0 : i64, tpu.core_type = #tpu.core_type<tc>, window_params = [{transform_indices = @transform_0, window_bounds = array<i64: 8, 32>}, {transform_indices = @transform_1, window_bounds = array<i64: 16, 32>}, {transform_indices = @transform_2, window_bounds = array<i64: 8, 1>}, {transform_indices = @transform_3, window_bounds = array<i64: 8, 16>}]} {
    %c0 = arith.constant 0 : index
    %c0_0 = arith.constant 0 : index
    %0 = vector.load %arg3[%c0, %c0_0] : memref<16x32xf32, #tpu.memory_space<vmem>>, vector<16x32xf32>
    %1 = arith.mulf %0, %0 : vector<16x32xf32>
    %cst = arith.constant dense<0.000000e+00> : vector<16xf32>
    %2 = vector.multi_reduction <add>, %1, %cst [1] : vector<16x32xf32> to vector<16xf32>
    %3 = vector.shape_cast %2 : vector<16xf32> to vector<16x1xf32>
    %cst_1 = arith.constant 1.000000e-24 : f32
    %4 = vector.broadcast %cst_1 : f32 to vector<16x1xf32>
    %5 = arith.maximumf %3, %4 : vector<16x1xf32>
    %6 = math.rsqrt %5 : vector<16x1xf32>
    %7 = vector.broadcast %6 : vector<16x1xf32> to vector<16x32xf32>
    %8 = arith.mulf %0, %7 : vector<16x32xf32>
    %c0_2 = arith.constant 0 : index
    %c0_3 = arith.constant 0 : index
    %9 = vector.load %arg2[%c0_2, %c0_3] : memref<8x32xf32, #tpu.memory_space<vmem>>, vector<8x32xf32>
    %cst_4 = arith.constant dense<0.000000e+00> : vector<8x16xf32>
    %10 = tpu.matmul %9, %8, %cst_4 {dimension_numbers = #tpu.dot_dimension_numbers<[1], [1], [0], [0], [0, 0, 1, 0], [], []>, precision = #tpu.contract_precision<fp32>} : vector<8x32xf32>, vector<16x32xf32>, vector<8x16xf32> -> vector<8x16xf32>
    %c0_5 = arith.constant 0 : index
    %c0_6 = arith.constant 0 : index
    %11 = vector.load %arg4[%c0_5, %c0_6] : memref<8x1xf32, #tpu.memory_space<vmem>>, vector<8x1xf32>
    %12 = vector.broadcast %11 : vector<8x1xf32> to vector<8x16xf32>
    %13 = arith.mulf %10, %12 : vector<8x16xf32>
    %c0_7 = arith.constant 0 : index
    %c0_8 = arith.constant 0 : index
    %14 = vector.load %arg5[%c0_7, %c0_8] : memref<8x16xf32, #tpu.memory_space<vmem>>, vector<8x16xf32>
    tpu.vector_store %arg5[%c0_7, %c0_8], %13 {strides = array<i32>} : memref<8x16xf32, #tpu.memory_space<vmem>>, vector<8x16xf32>,
    return
  }
  func.func @transform_0(%arg0: i32, %arg1: i32) -> (i32, i32) {
    %c0_i32 = arith.constant 0 : i32
    %c0_i32_0 = arith.constant 0 : i32
    return %arg1, %c0_i32 : i32, i32
  }
  func.func @transform_1(%arg0: i32, %arg1: i32) -> (i32, i32) {
    %c0_i32 = arith.constant 0 : i32
    %c0_i32_0 = arith.constant 0 : i32
    return %arg0, %c0_i32 : i32, i32
  }
  func.func @transform_2(%arg0: i32, %arg1: i32) -> (i32, i32) {
    %c0_i32 = arith.constant 0 : i32
    %c0_i32_0 = arith.constant 0 : i32
    return %arg1, %c0_i32 : i32, i32
  }
  func.func @transform_3(%arg0: i32, %arg1: i32) -> (i32, i32) {
    %c0_i32 = arith.constant 0 : i32
    return %arg1, %arg0 : i32, i32
  }
}

</mosaic_0001>

<bundles_post_ra>
// kernel: tpu_custom_call.1
= control target key start
LH: loop header
LB: loop body
LE: loop exit
PB: predicated region body
PF: predicated region fallthrough
CT: control target
= control target key end

     0   :  { %8 = vsyncpa [#allocation3], 0  ;;  %s724_s0 = inlined_call_operand.vmem [shape: f32[8,32], index: 0, kind: input, shape index: {}]   ;;  %s725_s1 = inlined_call_operand.hbm [shape: f32[16,32], index: 1, kind: input, shape index: {}]   ;;  %s726_s2 = inlined_call_operand.vmem [shape: f32[8,1], index: 2, kind: input, shape index: {}]   ;;  %s727_s3 = inlined_call_operand.hbm [shape: f32[8,16], index: 3, kind: output, shape index: {}]  }
   0x1   :  { %9 = vsyncpa [#allocation4], 0  ;;  %s656_s12 = smov [#allocation2]  }
   0x2   :  { %s17_s13 = sshll.u32 %s656_s12, 4  ;;  %s18_s13 = int_to_ptr.vmem [resolvable:$true] %s17_s13 }
   0x3   :  { %s620_s14 = scalar_lea.vmem %s18_s13, 256  ;;  %p625_p1 = scmp.lt.s32.totalorder %s18_s13, %s18_s13 }
   0x4   :  { %p621_p0 = scmp.ne.s32.totalorder %s18_s13, %s620_s14  ;;  %p626_p2 = scmp.lt.s32.totalorder %s620_s14, %s620_s14 }
   0x6   :  { %p627_p3 = por %p626_p2, %p625_p1 }
   0x8   :  { %p628_p4 = pnand %p627_p3, %p621_p0 }
   0xa   :  { %631 = shalt.err (!%p628_p4)
}
   0xb   :  { %s657_s15 = smov 128   ;;  %s658_s16 = smov 8  }
   0xc   :  { %23 = dma.hbm_to_vmem [thread:$0]  %s725_s1, 256, %s18_s13, [#allocation3], %s657_s15, %s657_s15, %s658_s16  }
   0xd   :  { %652 = dma.done.wait [#allocation3], 256  }
   0xe   :  { %653 = vsyncadd [#allocation3], 4294967040  ;;  %v30_v0 = vld [vmem:[#allocation2 + $0x8] sm:$0xff]  ;;  %vm33_vm0 = vcmask 261120   ;;  %v29_v1 = vld [vmem:[#allocation2] sm:$0xff]  ;;  %v659_v6 = vmov 0.0  }
   0xf   :  { %v32_v2 = vmul.f32 %v30_v0, %v30_v0  ;;  %v31_v3 = vmul.f32 %v29_v1, %v29_v1  ;;  %557 = vmatprep.subr.mxu0 %v659_v6  ;;  %564 = vmatprep.subr.mxu1 %v659_v6  ;;  %vm660_vm1 = vmmov 0   ;;  %v515_v7 = vld [vmem:[%s726_s2] sm:$0xff]  ;;  %v661_v8 = vmov 0  }
  0x10   :  { %561 = vmatprep.mubr.msk.f32.mxu0 %vm660_vm1, %v659_v6  ;;  %568 = vmatprep.mubr.msk.f32.mxu1 %vm660_vm1, %v659_v6  ;;  %v46_v11 = vld [vmem:[%s724_s0] sm:$0xff]  ;;  %s662_s0 = smov [#allocation5]   ;;  %vm522_vm2 = vcmask 130048  }
  0x11   :  { %v37_v4 = vsel %vm33_vm0, %v32_v2, 0.0  ;;  %v34_v5 = vsel %vm33_vm0, %v31_v3, 0.0  ;;  %606 = vset.pattern.permute.xlu1 %v661_v8  ;;  %607 = vset.pattern.permute.xlu0 %v661_v8  ;;  %v48_v14 = vsel %vm33_vm0, %v46_v11, 0  ;;  %s530_s2 = sshll.u32 %s662_s0, 4  ;;  %s531_s2 = int_to_ptr.vmem [resolvable:$true] %s530_s2 }
  0x12   :  { %38 = vadd.xlane.f32.xlu0 %v37_v4  ;;  %518 = vperm.xlu1 %606, %v515_v7   ;;  %v123_v15 = vand.u32 4294901760, %v48_v14  ;;  %s632_s22 = scalar_lea.vmem %s531_s2, 128  ;;  %p637_p6 = scmp.lt.s32.totalorder %s531_s2, %s531_s2 }
  0x13   :  { %p633_p5 = scmp.ne.s32.totalorder %s531_s2, %s632_s22  ;;  %p638_p7 = scmp.lt.s32.totalorder %s632_s22, %s632_s22 }
  0x14   :  { %v124_v16 = vsub.f32 %v48_v14, %v123_v15 }
  0x15   :  { %p639_p8 = por %p638_p7, %p637_p6 }
  0x16   :  { %35 = vadd.xlane.f32.xlu0 %v34_v5  ;;  %v125_v19 = vand.u32 4294901760, %v124_v16 }
  0x17   :  { %p640_p9 = pnand %p639_p8, %p633_p5 }
  0x18   :  { %v126_v24 = vsub.f32 %v124_v16, %v125_v19 }
  0x1a   :  { %v127_v29 = vand.u32 4294901760, %v126_v24 }
  0x8d   :  { %v519_v51 = vpop.permute.xlu1 %518 }
  0x9b   :  { %v39_v9 = vpop.xlane.xlu0 %38 }
  0x9c   :  { %v41_v10 = vmax.f32 %v39_v9, 1e-24 }
  0x9e   :  { %608 = vrsqrt.f32 %v41_v10 }
  0x9f   :  { %v36_v12 = vpop.xlane.xlu0 %35 }
  0xa0   :  { %v40_v13 = vmax.f32 %v36_v12, 1e-24 }
  0xa2   :  { %610 = vrsqrt.f32 %v40_v13 }
  0xab   :  { %v609_v17 = vpop.eup %608 }
  0xac   :  { %v45_v18 = vmul.f32 %v609_v17, %v30_v0 }
  0xae   :  { %v54_v20 = vsel %vm33_vm0, %v45_v18, 0 }
  0xaf   :  { %v611_v21 = vpop.eup %610  ;;  %v85_v22 = vand.u32 4294901760, %v54_v20 }
  0xb0   :  { %v44_v23 = vmul.f32 %v611_v21, %v29_v1 }
  0xb1   :  { %558 = vmatpush3.xpose.msra.mxu0 %v85_v22  ;;  %v163_v25 = vsub.f32 %v54_v20, %v85_v22 }
  0xb2   :  { %559 = vmatprep.subr.mxu0 %v659_v6  ;;  %v51_v26 = vsel %vm33_vm0, %v44_v23, 0 }
  0xb3   :  { %v88_v27 = vand.u32 4294901760, %v51_v26  ;;  %v164_v28 = vand.u32 4294901760, %v163_v25 }
  0xb5   :  { %560 = vmatpush3.xpose.msra.mxu0 %v88_v27  ;;  %v165_v30 = vsub.f32 %v163_v25, %v164_v28  ;;  %v170_v31 = vsub.f32 %v51_v26, %v88_v27 }
  0xb6   :  { %571 = vmatprep.subr.mxu0 %v659_v6 }
  0xb7   :  { %v166_v32 = vand.u32 4294901760, %v165_v30  ;;  %v171_v33 = vand.u32 4294901760, %v170_v31 }
  0xb8   :  { %562 = vmatmul.mubr.f32.vlgmr.msra.gmra.mxu0 %v127_v29 }
  0xb9   :  { %565 = vmatpush3.xpose.msra.mxu1 %v166_v32  ;;  %572 = vmatpush3.xpose.msra.mxu0 %v163_v25  ;;  %v172_v34 = vsub.f32 %v170_v31, %v171_v33 }
  0xba   :  { %566 = vmatprep.subr.mxu1 %v659_v6  ;;  %573 = vmatprep.subr.mxu0 %v659_v6 }
  0xbb   :  { %v173_v35 = vand.u32 4294901760, %v172_v34  ;;  %575 = vmatprep.mubr.msk.f32.mxu0 %vm660_vm1, %v659_v6 }
  0xbd   :  { %567 = vmatpush3.xpose.msra.mxu1 %v173_v35  ;;  %574 = vmatpush3.xpose.msra.mxu0 %v170_v31 }
  0xbe   :  { %578 = vmatprep.subr.mxu1 %v659_v6  ;;  %585 = vmatprep.subr.mxu0 %v659_v6 }
  0xc0   :  { %569 = vmatmul.mubr.f32.vlgmr.msra.gmra.mxu1 %v123_v15  ;;  %576 = vmatmul.mubr.f32.vlgmr.msra.gmra.mxu0 %v124_v16 }
  0xc1   :  { %579 = vmatpush3.xpose.msra.mxu1 %v85_v22  ;;  %586 = vmatpush3.xpose.msra.mxu0 %v164_v28 }
  0xc2   :  { %580 = vmatprep.subr.mxu1 %v659_v6  ;;  %587 = vmatprep.subr.mxu0 %v659_v6 }
  0xc3   :  { %582 = vmatprep.mubr.msk.f32.mxu1 %vm660_vm1, %v659_v6  ;;  %589 = vmatprep.mubr.msk.f32.mxu0 %vm660_vm1, %v659_v6 }
  0xc5   :  { %581 = vmatpush3.xpose.msra.mxu1 %v88_v27  ;;  %588 = vmatpush3.xpose.msra.mxu0 %v171_v33 }
  0xc6   :  { %592 = vmatprep.subr.mxu1 %v659_v6 }
  0xc8   :  { %583 = vmatmul.mubr.f32.vlgmr.msra.gmra.mxu1 %v125_v19  ;;  %590 = vmatmul.mubr.f32.vlgmr.msra.gmra.mxu0 %v123_v15 }
  0xc9   :  { %593 = vmatpush3.xpose.msra.mxu1 %v85_v22  ;;  %596 = vmatprep.mubr.msk.f32.mxu1 %vm660_vm1, %v659_v6 }
  0xca   :  { %594 = vmatprep.subr.mxu1 %v659_v6 }
  0xcd   :  { %595 = vmatpush3.xpose.msra.mxu1 %v88_v27 }
  0xd0   :  { %597 = vmatmul.mubr.f32.vlgmr.msra.gmra.mxu1 %v123_v15 }
 0x178   :  { %v129_v36 = vpop.f32.mrf.mxu0 }
 0x17a   :  { %v563_v37 = vpop.f32.mrf.mxu0 }
 0x180   :  { %v210_v38 = vpop.f32.mrf.mxu1  ;;  %v286_v39 = vpop.f32.mrf.mxu0 }
 0x181   :  { %v211_v42 = vadd.f32 %v210_v38, %v129_v36 }
 0x182   :  { %v570_v40 = vpop.f32.mrf.mxu1  ;;  %v577_v41 = vpop.f32.mrf.mxu0 }
 0x183   :  { %v287_v45 = vadd.f32 %v286_v39, %v211_v42 }
 0x188   :  { %v361_v43 = vpop.f32.mrf.mxu1  ;;  %v438_v44 = vpop.f32.mrf.mxu0 }
 0x189   :  { %v362_v48 = vadd.f32 %v361_v43, %v287_v45 }
 0x18a   :  { %v584_v46 = vpop.f32.mrf.mxu1  ;;  %v591_v47 = vpop.f32.mrf.mxu0 }
 0x18b   :  { %v439_v49 = vadd.f32 %v438_v44, %v362_v48 }
 0x190   :  { %v511_v50 = vpop.f32.mrf.mxu1 }
 0x191   :  { %v512_v52 = vadd.f32 %v511_v50, %v439_v49 }
 0x192   :  { %v598_v53 = vpop.f32.mrf.mxu1 }
 0x193   :  { %v521_v54 = vmul.f32 %v519_v51, %v512_v52 }
 0x195   :  { %523 = vst.msk [vmem:[#allocation5] sm:$0xff] %vm522_vm2, %v521_v54 }
 0x196   :  { %643 = shalt.err (!%p640_p9)
}
 0x197   :  { %533 = dma.vmem_to_hbm [thread:$0]  %s531_s2, 128, %s727_s3, [#allocation4]  }
 0x198   :  { %654 = dma.done.wait [#allocation4], 128  }
 0x199   :  { %655 = vsyncadd [#allocation4], 4294967168 }
 0x19a   :  { %537 = vsyncpa [#allocation3], 1 }
 0x19b   :  { %538 = vsyncpa [#allocation4], 1 }

</bundles_post_ra>
